<compile_context>
chip_gen: v6e
topology: v6e:2x2x1
jax: 0.10.0
libtpu: 0.0.40
codegen_flags: <defaults>
</compile_context>

<pallas_src>
import functools

import numpy as np
import jax
import jax.numpy as jnp
from jax import lax
from jax.experimental import pallas as pl
from jax.experimental.pallas import tpu as pltpu


# ----------------------------------------------------------------------------
# Host-side SSM kernel generation (parameter setup glue; mirrors the torch code)
# ----------------------------------------------------------------------------
def hippo_matrix(N):
    A = np.zeros((N, N), dtype=np.float32)
    for i in range(N):
        for j in range(N):
            if i > j:
                A[i, j] = -((2 * i + 1) ** 0.5) * ((2 * j + 1) ** 0.5)
            elif i == j:
                A[i, j] = -(i + 1)
    return A


def cMV(x, y, Vs):
    # x: (L,), y: (N,), Vs: (N, 1) -> (L,)
    return (Vs.reshape(-1) / (x[:, None] - y)).sum(axis=1)


def dplr(A):
    rank = 1
    U, S, Vh = np.linalg.svd(A, full_matrices=False)
    Lambda = np.diag(np.diag(A))
    P = U[:, :rank] * np.sqrt(S[:rank])
    Q = Vh[:rank, :].conj().T * np.sqrt(S[:rank])
    return Lambda, P, Q


def omega(L):
    k = np.arange(L)
    return np.exp(2j * np.pi * k / L).astype(np.complex64)


def ssm_gen(delta, A, B, C, L):
    N = A.shape[0]
    I = np.eye(N, dtype=A.dtype)
    Ad = np.linalg.inv(I - delta / 2 * A) @ (I + delta / 2 * A)
    # NOTE: torch's `Ad ** L` is elementwise power (not matrix power) — keep that.
    Cts = C.conj().T @ (I - Ad ** L)                       # (1, N)
    Lambda, P, Q = dplr(A)
    Omega = omega(L)
    x_Mc = (2.0 / delta) * (1 - Omega) / (1 + Omega)       # (L,)
    y_Mc = np.diag(Lambda)                                 # (N,)
    k00 = cMV(x_Mc, y_Mc, Cts.T * B)
    k01 = cMV(x_Mc, y_Mc, Cts.T * P)
    k10 = cMV(x_Mc, y_Mc, Q.conj() * P)
    k11 = cMV(x_Mc, y_Mc, Q.conj() * B)
    Kc = 2.0 / (1 + Omega) * (k00 - k01 / (1 + k10) * k11)
    return Kc


def ssm_conv(delta, A, B, C, L):
    Kc = ssm_gen(delta, A, B, C, L)
    Kd = np.fft.ifft(Kc).real.astype(np.float32)           # (L,) float32
    return Kd


# ----------------------------------------------------------------------------
# Pallas kernel: y = Kd @ x  (L reduction axis, output block resident in VMEM)
# ----------------------------------------------------------------------------
def _kd_matvec_kernel(kd_ref, x_ref, o_ref, *, L, tile_l, mask_l):
    # kd_ref: (1, tile_l) f32, x_ref: (tile_l, tile_d) x.dtype, o_ref: (1, tile_d) f32
    k = pl.program_id(1)

    @pl.when(k == 0)
    def _():
        o_ref[...] = jnp.zeros_like(o_ref)

    kd_blk = kd_ref[...]
    x_blk = x_ref[...]

    if mask_l:
        # Last L tile overhangs the array: its VMEM contents are unspecified,
        # so zero both operands past row L before the dot.
        base = k * tile_l
        row_ids = base + lax.broadcasted_iota(jnp.int32, (tile_l, 1), 0)
        col_ids = base + lax.broadcasted_iota(jnp.int32, (1, tile_l), 1)
        x_blk = jnp.where(row_ids < L, x_blk, jnp.zeros_like(x_blk))
        kd_blk = jnp.where(col_ids < L, kd_blk, jnp.zeros_like(kd_blk))

    # Keep the bf16 MXU path when x is bf16 (f32 accumulation either way).
    kd_blk = kd_blk.astype(x_blk.dtype)
    precision = (lax.Precision.HIGHEST
                 if x_blk.dtype == jnp.float32 else None)

    o_ref[...] += jnp.dot(kd_blk, x_blk,
                          preferred_element_type=jnp.float32,
                          precision=precision)


def _round_up(a, b):
    return ((a + b - 1) // b) * b


@functools.lru_cache(maxsize=1)
def _vmem_config():
    """(per_buffer_bytes, vmem_limit_bytes) tuned per chip generation."""
    try:
        cap = pltpu.get_tpu_info().vmem_capacity_bytes
    except Exception:
        cap = 64 << 20                              # conservative (v7x-sized)
    if cap >= (96 << 20):                           # v5e / v6e: 128 MiB physical
        return 28 << 20, 96 << 20
    return 16 << 20, 48 << 20                       # v7x: 64 MiB physical


def _choose_tiles(L, D, itemsize, per_buffer_bytes):
    """Pick (tile_l, tile_d); no HBM padding — ragged tails handled in-kernel."""
    # --- D (lane) tile: full-width contiguous rows when small; >= 2 parallel
    #     tiles for large D so both v7x TensorCores get work.
    if D < 512:
        tile_d = D                                   # full-dim (no 128 rule)
    else:
        Dp = _round_up(D, 128)
        tile_d = _round_up(-(-Dp // 2), 128)         # ~half width, 128-aligned
        min_tile_l = min(L, 512)
        cap = max(128, (per_buffer_bytes // (itemsize * min_tile_l)) // 128 * 128)
        tile_d = min(tile_d, cap)

    # --- L (reduction) tile: whole L if one block fits the budget, else a
    #     multiple of 128 (Kd's lane dim must be 128-aligned or full-L).
    max_tile_l = per_buffer_bytes // (itemsize * tile_d)
    if L <= max_tile_l:
        tile_l = L                                   # full-dim, single step
    else:
        tile_l = max(128, (max_tile_l // 128) * 128)
    return tile_l, tile_d


def s4_apply(kd, x, per_buffer_bytes=None):
    """kd: (L,) float32, x: (L, D) -> (D,) float32 (== Kd @ x)."""
    L, D = x.shape
    itemsize = jnp.dtype(x.dtype).itemsize
    cfg_buffer, vmem_limit = _vmem_config()
    if per_buffer_bytes is None:
        per_buffer_bytes = cfg_buffer

    tile_l, tile_d = _choose_tiles(L, D, itemsize, per_buffer_bytes)
    grid = (pl.cdiv(D, tile_d), pl.cdiv(L, tile_l))  # D parallel, L reduction last
    mask_l = (L % tile_l) != 0

    kd2 = kd.astype(jnp.float32).reshape(1, L)

    kernel = functools.partial(_kd_matvec_kernel,
                               L=L, tile_l=tile_l, mask_l=mask_l)

    out = pl.pallas_call(
        kernel,
        out_shape=jax.ShapeDtypeStruct((1, D), jnp.float32),
        grid=grid,
        in_specs=[
            pl.BlockSpec((1, tile_l), lambda j, k: (0, k)),        # Kd chunk
            pl.BlockSpec((tile_l, tile_d), lambda j, k: (k, j)),   # x tile
        ],
        out_specs=pl.BlockSpec((1, tile_d), lambda j, k: (0, j)),  # resident acc
        compiler_params=pltpu.CompilerParams(
            dimension_semantics=("parallel", "arbitrary"),
            vmem_limit_bytes=vmem_limit),
        cost_estimate=pl.CostEstimate(
            flops=2 * L * D,
            transcendentals=0,
            bytes_accessed=itemsize * L * D + 4 * L + 4 * D),
    )(kd2, x)
    return out[0]                                                  # (D,)


_s4_apply_jit = jax.jit(s4_apply)


# ----------------------------------------------------------------------------
# Module equivalent
# ----------------------------------------------------------------------------
class S4Conv1D:
    def __init__(self, N=3, F=1, delta=1, key=None):
        self.N, self.F, self.delta = N, F, delta
        if key is None:
            key = jax.random.PRNGKey(0)
        kb, kc = jax.random.split(key)
        # Same shapes/dtypes as the torch module's parameters.
        self.A = hippo_matrix(N).astype(np.complex64)                      # (N, N)
        self.B = np.asarray(jax.random.normal(kb, (N, 1)),
                            dtype=np.float32).astype(np.complex64)         # (N, 1)
        self.C = np.asarray(jax.random.normal(kc, (N, 1)),
                            dtype=np.float32).astype(np.complex64)         # (N, 1)
        # Kd only depends on (params, L): compute once per L and keep on device.
        self._kd_cache = {}

    def kd_for_length(self, L):
        if L not in self._kd_cache:
            # TODO(synk): complex SVD/inverse/iFFT Kd generation stays host-side
            # numpy (tiny N=3 / L-length, parameter-only); cached per L so it is
            # off the per-call hot path.
            kd = ssm_conv(self.delta, self.A, self.B, self.C, L)           # (L,)
            self._kd_cache[L] = jax.device_put(jnp.asarray(kd))
        return self._kd_cache[L]

    def __call__(self, x):
        L = x.shape[0]
        return _s4_apply_jit(self.kd_for_length(L), x)


if __name__ == "__main__":
    key = jax.random.PRNGKey(0)
    k_param, k_x, k_x2 = jax.random.split(key, 3)

    model = S4Conv1D(N=3, F=1, delta=1, key=k_param)

    L, D = 16, 128
    x = jax.random.normal(k_x, (L, D), dtype=jnp.float32)

    y = jax.block_until_ready(model(x))
    # Second call exercises the cached-Kd / jitted fast path.
    y2 = jax.block_until_ready(model(x))

    # Reference check (plain JAX) against the Pallas kernel output.
    Kd_ref = jnp.asarray(ssm_conv(model.delta, model.A, model.B, model.C, L))
    y_ref = Kd_ref @ x
    np.testing.assert_allclose(np.asarray(y), np.asarray(y_ref),
                               rtol=1e-3, atol=1e-3)
    np.testing.assert_allclose(np.asarray(y2), np.asarray(y_ref),
                               rtol=1e-3, atol=1e-3)

    # Ragged-shape check: forces a multi-step L reduction (tile_l = 128 < L)
    # with a masked last L tile and a non-128-aligned D, no HBM padding.
    L2, D2 = 200, 100
    x2 = jax.random.normal(k_x2, (L2, D2), dtype=jnp.float32)
    kd2 = model.kd_for_length(L2)
    y3 = jax.block_until_ready(s4_apply(kd2, x2, per_buffer_bytes=64 * 1024))
    y3_ref = kd2 @ x2
    np.testing.assert_allclose(np.asarray(y3), np.asarray(y3_ref),
                               rtol=1e-3, atol=1e-3)

    print("KERNEL_OK")
</pallas_src>

<mosaic_0001>
module attributes {stable_mosaic.version = 11 : i64} {
  func.func @_kd_matvec_kernel(%arg0: i32, %arg1: i32, %arg2: memref<1x16xf32, #tpu.memory_space<vmem>>, %arg3: memref<16x128xf32, #tpu.memory_space<vmem>>, %arg4: memref<1x128xf32, #tpu.memory_space<vmem>>) attributes {dimension_semantics = [#tpu.dimension_semantics<parallel>, #tpu.dimension_semantics<arbitrary>], iteration_bounds = array<i64: 1, 1>, scalar_prefetch = 0 : i64, scratch_operands = 0 : i64, tpu.core_type = #tpu.core_type<tc>, window_params = [{transform_indices = @transform_0, window_bounds = array<i64: 1, 16>}, {transform_indices = @transform_1, window_bounds = array<i64: 16, 128>}, {transform_indices = @transform_2, window_bounds = array<i64: 1, 128>}]} {
    %c0_i32 = arith.constant 0 : i32
    %0 = arith.cmpi eq, %arg1, %c0_i32 : i32
    %1 = arith.extui %0 : i1 to i32
    %c0_i32_0 = arith.constant 0 : i32
    %2 = arith.cmpi ne, %1, %c0_i32_0 : i32
    scf.if %2 {
      %cst_8 = arith.constant 0.000000e+00 : f32
      %9 = vector.broadcast %cst_8 : f32 to vector<1x128xf32>
      %c0_9 = arith.constant 0 : index
      %c0_10 = arith.constant 0 : index
      %10 = vector.load %arg4[%c0_9, %c0_10] : memref<1x128xf32, #tpu.memory_space<vmem>>, vector<1x128xf32>
      tpu.vector_store %arg4[%c0_9, %c0_10], %9 {strides = array<i32>} : memref<1x128xf32, #tpu.memory_space<vmem>>, vector<1x128xf32>,
    } else {
    }
    %c0 = arith.constant 0 : index
    %c0_1 = arith.constant 0 : index
    %3 = vector.load %arg2[%c0, %c0_1] : memref<1x16xf32, #tpu.memory_space<vmem>>, vector<1x16xf32>
    %c0_2 = arith.constant 0 : index
    %c0_3 = arith.constant 0 : index
    %4 = vector.load %arg3[%c0_2, %c0_3] : memref<16x128xf32, #tpu.memory_space<vmem>>, vector<16x128xf32>
    %c0_4 = arith.constant 0 : index
    %c0_5 = arith.constant 0 : index
    %5 = vector.load %arg4[%c0_4, %c0_5] : memref<1x128xf32, #tpu.memory_space<vmem>>, vector<1x128xf32>
    %cst = arith.constant dense<0.000000e+00> : vector<1x128xf32>
    %6 = tpu.matmul %3, %4, %cst {dimension_numbers = #tpu.dot_dimension_numbers<[1], [0], [0], [1], [0, 0, 1, 1], [], []>, precision = #tpu.contract_precision<fp32>} : vector<1x16xf32>, vector<16x128xf32>, vector<1x128xf32> -> vector<1x128xf32>
    %7 = arith.addf %5, %6 : vector<1x128xf32>
    %c0_6 = arith.constant 0 : index
    %c0_7 = arith.constant 0 : index
    %8 = vector.load %arg4[%c0_6, %c0_7] : memref<1x128xf32, #tpu.memory_space<vmem>>, vector<1x128xf32>
    tpu.vector_store %arg4[%c0_6, %c0_7], %7 {strides = array<i32>} : memref<1x128xf32, #tpu.memory_space<vmem>>, vector<1x128xf32>,
    return
  }
  func.func @transform_0(%arg0: i32, %arg1: i32) -> (i32, i32) {
    %c0_i32 = arith.constant 0 : i32
    %c0_i32_0 = arith.constant 0 : i32
    return %c0_i32, %arg1 : i32, i32
  }
  func.func @transform_1(%arg0: i32, %arg1: i32) -> (i32, i32) {
    %c0_i32 = arith.constant 0 : i32
    return %arg1, %arg0 : i32, i32
  }
  func.func @transform_2(%arg0: i32, %arg1: i32) -> (i32, i32) {
    %c0_i32 = arith.constant 0 : i32
    %c0_i32_0 = arith.constant 0 : i32
    return %c0_i32, %arg0 : i32, i32
  }
}

</mosaic_0001>

<bundles_post_ra>
// kernel: s4_apply.1
= control target key start
LH: loop header
LB: loop body
LE: loop exit
PB: predicated region body
PF: predicated region fallthrough
CT: control target
= control target key end

     0   :  { %7 = vsyncpa [#allocation3], 0  ;;  %s661_s0 = inlined_call_operand.vmem [shape: f32[1,16], index: 0, kind: input, shape index: {}]   ;;  %s662_s1 = inlined_call_operand.hbm [shape: f32[16,128], index: 1, kind: input, shape index: {}]   ;;  %s663_s2 = inlined_call_operand.hbm [shape: f32[1,128], index: 2, kind: output, shape index: {}]  }
   0x1   :  { %8 = vsyncpa [#allocation4], 0  ;;  %s625_s9 = smov [#allocation2]  }
   0x2   :  { %s16_s10 = sshll.u32 %s625_s9, 4  ;;  %s17_s10 = int_to_ptr.vmem [resolvable:$true] %s16_s10 }
   0x3   :  { %s589_s11 = scalar_lea.vmem %s17_s10, 256  ;;  %p594_p1 = scmp.lt.s32.totalorder %s17_s10, %s17_s10 }
   0x4   :  { %p590_p0 = scmp.ne.s32.totalorder %s17_s10, %s589_s11  ;;  %p595_p2 = scmp.lt.s32.totalorder %s589_s11, %s589_s11 }
   0x6   :  { %p596_p3 = por %p595_p2, %p594_p1 }
   0x8   :  { %p597_p4 = pnand %p596_p3, %p590_p0 }
   0xa   :  { %600 = shalt.err (!%p597_p4)
}
   0xb   :  { %s626_s12 = smov 128   ;;  %s627_s13 = smov 8  }
   0xc   :  { %22 = dma.hbm_to_vmem [thread:$0]  %s662_s1, 256, %s17_s10, [#allocation3], %s626_s12, %s626_s12, %s627_s13  }
   0xd   :  { %621 = dma.done.wait [#allocation3], 256  }
   0xe   :  { %622 = vsyncadd [#allocation3], 4294967040  ;;  %v628_v0 = vmov 0.0   ;;  %vm629_vm0 = vmmov 0   ;;  %vm35_vm1 = vcmask 130048   ;;  %v33_v1 = vld [vmem:[#allocation2 + $0x8] sm:$0xff] }
   0xf   :  { %30 = vst [vmem:[#allocation5] sm:$0x1] %v628_v0  ;;  %533 = vmatprep.subr.mxu0 %v628_v0  ;;  %540 = vmatprep.subr.mxu1 %v628_v0  ;;  %v32_v2 = vld [vmem:[#allocation2] sm:$0xff]  ;;  %v68_v4 = vand.u32 4294901760, %v33_v1 }
  0x10   :  { %537 = vmatprep.mubr.msk.f32.mxu0 %vm629_vm0, %v628_v0  ;;  %544 = vmatprep.mubr.msk.f32.mxu1 %vm629_vm0, %v628_v0  ;;  %v31_v3 = vld [vmem:[%s661_s0] sm:$0x1]  ;;  %v71_v5 = vand.u32 4294901760, %v32_v2  ;;  %s630_s0 = smov [#allocation5]  }
  0x11   :  { %v37_v6 = vsel %vm35_vm1, %v31_v3, 0  ;;  %534 = vmatpush3.msra.mxu0 %v68_v4  ;;  %v146_v8 = vsub.f32 %v33_v1, %v68_v4  ;;  %s506_s1 = sshll.u32 %s630_s0, 4  ;;  %s507_s1 = int_to_ptr.vmem [resolvable:$true] %s506_s1 }
  0x12   :  { %v106_v7 = vand.u32 4294901760, %v37_v6  ;;  %v153_v9 = vsub.f32 %v32_v2, %v71_v5  ;;  %535 = vmatprep.subr.mxu0 %v628_v0  ;;  %s601_s18 = scalar_lea.vmem %s507_s1, 16  ;;  %s605_s19 = scalar_lea.vmem %s507_s1, 32 }
  0x13   :  { %536 = vmatpush3.msra.mxu0 %v71_v5  ;;  %v147_v11 = vand.u32 4294901760, %v146_v8  ;;  %p602_p5 = scmp.ne.s32.totalorder %s507_s1, %s601_s18  ;;  %p606_p6 = scmp.lt.s32.totalorder %s507_s1, %s507_s1 }
  0x14   :  { %v107_v10 = vsub.f32 %v37_v6, %v106_v7  ;;  %v154_v12 = vand.u32 4294901760, %v153_v9  ;;  %547 = vmatprep.subr.mxu0 %v628_v0  ;;  %p607_p7 = scmp.lt.s32.totalorder %s605_s19, %s601_s18 }
  0x15   :  { %v148_v14 = vsub.f32 %v146_v8, %v147_v11 }
  0x16   :  { %v108_v13 = vand.u32 4294901760, %v107_v10  ;;  %v155_v15 = vsub.f32 %v153_v9, %v154_v12  ;;  %v34_v34 = vld [vmem:[#allocation5] sm:$0x1]  ;;  %p608_p8 = por %p607_p7, %p606_p6 }
  0x17   :  { %v149_v17 = vand.u32 4294901760, %v148_v14 }
  0x18   :  { %v109_v16 = vsub.f32 %v107_v10, %v108_v13  ;;  %v156_v18 = vand.u32 4294901760, %v155_v15  ;;  %p609_p9 = pnand %p608_p8, %p602_p5 }
  0x19   :  { %541 = vmatpush3.msra.mxu1 %v149_v17 }
  0x1a   :  { %v110_v19 = vand.u32 4294901760, %v109_v16  ;;  %542 = vmatprep.subr.mxu1 %v628_v0 }
  0x1b   :  { %543 = vmatpush3.msra.mxu1 %v156_v18 }
  0x1c   :  { %538 = vmatmul.mubr.f32.vlgmr.msra.gmra.mxu0 %v110_v19  ;;  %545 = vmatmul.mubr.f32.vlgmr.msra.gmra.mxu1 %v106_v7 }
  0x1d   :  { %548 = vmatpush3.msra.mxu0 %v146_v8  ;;  %554 = vmatprep.subr.mxu1 %v628_v0 }
  0x1e   :  { %549 = vmatprep.subr.mxu0 %v628_v0  ;;  %551 = vmatprep.mubr.msk.f32.mxu0 %vm629_vm0, %v628_v0 }
  0x1f   :  { %550 = vmatpush3.msra.mxu0 %v153_v9  ;;  %555 = vmatpush3.msra.mxu1 %v68_v4 }
  0x20   :  { %552 = vmatmul.mubr.f32.vlgmr.msra.gmra.mxu0 %v107_v10  ;;  %556 = vmatprep.subr.mxu1 %v628_v0 }
  0x21   :  { %561 = vmatprep.subr.mxu0 %v628_v0  ;;  %557 = vmatpush3.msra.mxu1 %v71_v5 }
  0x22   :  { %558 = vmatprep.mubr.msk.f32.mxu1 %vm629_vm0, %v628_v0  ;;  %562 = vmatpush3.msra.mxu0 %v147_v11 }
  0x23   :  { %559 = vmatmul.mubr.f32.vlgmr.msra.gmra.mxu1 %v108_v13  ;;  %563 = vmatprep.subr.mxu0 %v628_v0 }
  0x24   :  { %568 = vmatprep.subr.mxu1 %v628_v0  ;;  %564 = vmatpush3.msra.mxu0 %v154_v12 }
  0x25   :  { %565 = vmatprep.mubr.msk.f32.mxu0 %vm629_vm0, %v628_v0  ;;  %569 = vmatpush3.msra.mxu1 %v68_v4 }
  0x26   :  { %566 = vmatmul.mubr.f32.vlgmr.msra.gmra.mxu0 %v106_v7  ;;  %570 = vmatprep.subr.mxu1 %v628_v0 }
  0x27   :  { %571 = vmatpush3.msra.mxu1 %v71_v5  ;;  %572 = vmatprep.mubr.msk.f32.mxu1 %vm629_vm0, %v628_v0 }
  0x28   :  { %573 = vmatmul.mubr.f32.vlgmr.msra.gmra.mxu1 %v106_v7 }
  0xdc   :  { %v112_v20 = vpop.f32.mrf.mxu0  ;;  %v193_v22 = vpop.f32.mrf.mxu1 }
  0xdd   :  { %v194_v23 = vadd.f32 %v193_v22, %v112_v20 }
  0xde   :  { %v539_v21 = vpop.f32.mrf.mxu0  ;;  %v546_v24 = vpop.f32.mrf.mxu1 }
  0xe0   :  { %v269_v25 = vpop.f32.mrf.mxu0 }
  0xe1   :  { %v270_v26 = vadd.f32 %v269_v25, %v194_v23 }
  0xe2   :  { %v553_v27 = vpop.f32.mrf.mxu0 }
  0xe3   :  { %v344_v28 = vpop.f32.mrf.mxu1 }
  0xe4   :  { %v345_v29 = vadd.f32 %v344_v28, %v270_v26 }
  0xe5   :  { %v560_v30 = vpop.f32.mrf.mxu1 }
  0xe6   :  { %v421_v31 = vpop.f32.mrf.mxu0 }
  0xe7   :  { %v422_v32 = vadd.f32 %v421_v31, %v345_v29 }
  0xe8   :  { %v567_v33 = vpop.f32.mrf.mxu0  ;;  %v494_v35 = vpop.f32.mrf.mxu1 }
  0xe9   :  { %v495_v36 = vadd.f32 %v494_v35, %v422_v32 }
  0xea   :  { %v574_v37 = vpop.f32.mrf.mxu1 }
  0xeb   :  { %v498_v38 = vadd.f32 %v495_v36, %v34_v34 }
  0xed   :  { %499 = vst [vmem:[#allocation5] sm:$0x1] %v498_v38 }
  0xee   :  { %612 = shalt.err (!%p609_p9)
}
  0xef   :  { %509 = dma.vmem_to_hbm [thread:$0]  %s507_s1, 16, %s663_s2, [#allocation4]  }
  0xf0   :  { %623 = dma.done.wait [#allocation4], 16  }
  0xf1   :  { %624 = vsyncadd [#allocation4], 4294967280 }
  0xf2   :  { %513 = vsyncpa [#allocation3], 1 }
  0xf3   :  { %514 = vsyncpa [#allocation4], 1 }

</bundles_post_ra>
